<compile_context>
chip_gen: v5e
topology: v5e:2x2
jax: 0.10.0
libtpu: 0.0.40
codegen_flags: <defaults>
</compile_context>

<pallas_src>
import functools

import jax
import jax.numpy as jnp
from jax.experimental import pallas as pl
from jax.experimental.pallas import tpu as pltpu


def _round_up(x, m):
    return ((x + m - 1) // m) * m


_DEFAULT_VMEM_BUDGET = 40 * 1024 * 1024   # residency decision (v7x: 64 MiB/TC physical)
_VMEM_LIMIT_BYTES = 48 * 1024 * 1024      # scoped VMEM requested from Mosaic (safe on all gens)


# ----------------------------------------------------------------------------
# Kernel 1 (hot path): weight + bias VMEM-resident, grid over M only.
#   o[tm, Np] = x[tm, Kp] @ W[Kp, Np] + b[1, Np]
# ----------------------------------------------------------------------------
def _affine_resident_kernel(x_ref, w_ref, b_ref, o_ref):
    acc = jnp.dot(x_ref[...], w_ref[...], preferred_element_type=jnp.float32)
    o_ref[...] = (acc + b_ref[...]).astype(o_ref.dtype)


# ----------------------------------------------------------------------------
# Kernel 2 (fallback for layers whose weight does not fit in VMEM):
#   (M, N, K) grid, f32 accumulator scratch, bias added once in finalize.
# ----------------------------------------------------------------------------
def _affine_3d_kernel(x_ref, w_ref, b_ref, o_ref, acc_ref):
    k = pl.program_id(2)

    @pl.when(k == 0)
    def _():
        acc_ref[...] = jnp.zeros_like(acc_ref)

    acc_ref[...] += jnp.dot(x_ref[...], w_ref[...],
                            preferred_element_type=jnp.float32)

    @pl.when(k == pl.num_programs(2) - 1)
    def _():
        o_ref[...] = (acc_ref[...] + b_ref[...]).astype(o_ref.dtype)


# ----------------------------------------------------------------------------
# Wrapper: y[:M, :orig_n] = x2d @ W.T + b, weight supplied pre-transposed.
# ----------------------------------------------------------------------------
def affine_pallas(x2d, w_t_p, bias_p, *, orig_n,
                  compute_dtype=jnp.bfloat16,
                  vmem_budget_bytes=_DEFAULT_VMEM_BUDGET,
                  tm=512, fallback_tk=None, out_dtype=None):
    """x2d: (M, K); w_t_p: (Kp, Np) pre-transposed zero-padded weight;
    bias_p: (1, Np) zero-padded f32 bias.  Returns (M, orig_n)."""
    M, K = x2d.shape
    Kp, Np = w_t_p.shape
    assert Kp >= K and Np >= orig_n and bias_p.shape == (1, Np)

    if out_dtype is None:
        out_dtype = x2d.dtype
    x2d = x2d.astype(compute_dtype)
    w_t_p = w_t_p.astype(compute_dtype)      # no-op when stored in compute_dtype
    bias_p = bias_p.astype(jnp.float32)

    in_bytes = jnp.dtype(compute_dtype).itemsize
    out_bytes = jnp.dtype(out_dtype).itemsize
    sub = 16 if in_bytes < 4 else 8          # sublane quantum (bf16 packs 2 rows)

    # ---- M tiling (shared by both paths) ----
    tm_e = int(min(tm, _round_up(M, sub)))
    # v7x megacore: guarantee >= 2 blocks along the parallel M axis so both
    # TensorCores get work (free on single-TC v5e/v6e).
    if M > sub and _round_up(M, tm_e) // tm_e < 2:
        tm_e = max(sub, _round_up((M + 1) // 2, sub))

    def _resident_bytes(tme):
        # Conservative: count the (constant-index) weight/bias as double-buffered.
        return (2 * Kp * Np * in_bytes + 2 * Np * 4
                + 2 * tme * Kp * in_bytes + 2 * tme * Np * out_bytes)

    resident = _resident_bytes(sub) <= vmem_budget_bytes

    if resident:
        # Shrink the M tile until the whole working set fits the per-core budget.
        while _resident_bytes(tm_e) > vmem_budget_bytes and tm_e > sub:
            tm_e = max(sub, _round_up(max(tm_e // 2, sub), sub))
        Mp = _round_up(M, tm_e)
        x_p = x2d if (Mp == M and Kp == K) else jnp.pad(
            x2d, ((0, Mp - M), (0, Kp - K)))

        out = pl.pallas_call(
            _affine_resident_kernel,
            out_shape=jax.ShapeDtypeStruct((Mp, Np), out_dtype),
            grid_spec=pltpu.PrefetchScalarGridSpec(
                num_scalar_prefetch=0,
                grid=(Mp // tm_e,),
                in_specs=[
                    pl.BlockSpec((tm_e, Kp), lambda i: (i, 0)),
                    pl.BlockSpec((Kp, Np), lambda i: (0, 0)),   # VMEM-resident
                    pl.BlockSpec((1, Np), lambda i: (0, 0)),    # VMEM-resident
                ],
                out_specs=pl.BlockSpec((tm_e, Np), lambda i: (i, 0)),
            ),
            compiler_params=pltpu.CompilerParams(
                dimension_semantics=("parallel",),
                vmem_limit_bytes=_VMEM_LIMIT_BYTES,
            ),
        )(x_p, w_t_p, bias_p)
        return out[:M, :orig_n]

    # ---- fallback: (M, N, K) grid for very large layers ----
    tn_e = int(min(512, Np))
    if fallback_tk is not None:
        tk_e = int(fallback_tk)
    else:
        tk_e = int(Kp) if Kp <= 2048 else 512
    Np2 = _round_up(Np, tn_e)
    Kp2 = _round_up(Kp, tk_e)
    Mp = _round_up(M, tm_e)

    x_p = x2d if (Mp == M and Kp2 == K) else jnp.pad(
        x2d, ((0, Mp - M), (0, Kp2 - K)))
    w_p = w_t_p if (Kp2 == Kp and Np2 == Np) else jnp.pad(
        w_t_p, ((0, Kp2 - Kp), (0, Np2 - Np)))
    b_p = bias_p if Np2 == Np else jnp.pad(bias_p, ((0, 0), (0, Np2 - Np)))

    out = pl.pallas_call(
        _affine_3d_kernel,
        out_shape=jax.ShapeDtypeStruct((Mp, Np2), out_dtype),
        grid_spec=pltpu.PrefetchScalarGridSpec(
            num_scalar_prefetch=0,
            grid=(Mp // tm_e, Np2 // tn_e, Kp2 // tk_e),
            in_specs=[
                pl.BlockSpec((tm_e, tk_e), lambda i, j, k: (i, k)),
                pl.BlockSpec((tk_e, tn_e), lambda i, j, k: (k, j)),
                pl.BlockSpec((1, tn_e), lambda i, j, k: (0, j)),
            ],
            out_specs=pl.BlockSpec((tm_e, tn_e), lambda i, j, k: (i, j)),
            scratch_shapes=[pltpu.VMEM((tm_e, tn_e), jnp.float32)],
        ),
        compiler_params=pltpu.CompilerParams(
            dimension_semantics=("parallel", "parallel", "arbitrary"),
            vmem_limit_bytes=_VMEM_LIMIT_BYTES,
        ),
    )(x_p, w_p, b_p)
    return out[:M, :orig_n]


# ----------------------------------------------------------------------------
# jitted forward (x pad -> pallas_call -> slice -> reshape fuse into 1 dispatch)
# ----------------------------------------------------------------------------
@functools.partial(jax.jit,
                   static_argnames=("out_dim", "compute_dtype",
                                    "vmem_budget_bytes"))
def _forward_impl(x, w_t_p, bias_p, *, out_dim, compute_dtype,
                  vmem_budget_bytes):
    B, T, D = x.shape
    x2d = x.reshape(B * T, D)
    y2d = affine_pallas(x2d, w_t_p, bias_p, orig_n=out_dim,
                        compute_dtype=compute_dtype,
                        vmem_budget_bytes=vmem_budget_bytes)
    return y2d.reshape(B, T, out_dim)


# ----------------------------------------------------------------------------
# constrain_orthonormal (training-time, no-grad weight update) — plain JAX glue
# ----------------------------------------------------------------------------
def constrain_orthonormal_jax(M, scale, update_speed=0.125):
    rows, cols = M.shape
    transposed = rows < cols
    W = M.T if transposed else M
    d = W.shape[0]
    P = W @ W.T
    if scale < 0.0:
        trace_P_Pt = jnp.sum(P ** 2)
        trace_P = jnp.trace(P)
        ratio = trace_P_Pt / trace_P
        scale_val = jnp.sqrt(ratio)
        ratio2 = ratio * d / trace_P
        update_speed = jnp.where(
            ratio2 > 1.1, update_speed * 0.25,
            jnp.where(ratio2 > 1.02, update_speed * 0.5, update_speed))
    else:
        scale_val = jnp.asarray(scale, M.dtype)
    scale2 = scale_val ** 2
    P = P - scale2 * jnp.eye(d, dtype=P.dtype)
    W_new = W + (P @ W) * (-4.0 * update_speed / scale2)
    return W_new.T if transposed else W_new


# ----------------------------------------------------------------------------
# Module wrapper
# ----------------------------------------------------------------------------
class OrthonormalLinearPallas:
    def __init__(self, feat_dim, out_dim, bias=True, scale=0.0, key=None,
                 compute_dtype=jnp.bfloat16,
                 vmem_budget_bytes=_DEFAULT_VMEM_BUDGET):
        self.feat_dim = feat_dim
        self.out_dim = out_dim
        self.scale = float(scale)
        self.compute_dtype = compute_dtype
        self.vmem_budget_bytes = int(vmem_budget_bytes)
        if key is None:
            key = jax.random.PRNGKey(0)
        kw, kb = jax.random.split(key)
        # matches NaturalAffineTransform.init_parameters():
        #   weight ~ N(0,1) * 1/sqrt(feat_dim*out_dim), bias ~ N(0,1)
        self.weight = (jax.random.normal(kw, (out_dim, feat_dim), jnp.float32)
                       * (1.0 / (feat_dim * out_dim) ** 0.5))
        self.bias = (jax.random.normal(kb, (1, out_dim), jnp.float32)
                     if bias else jnp.zeros((1, out_dim), jnp.float32))
        self._refresh_derived()

    def _refresh_derived(self):
        """One-time (per weight update) transpose + pad + cast of the weight."""
        K, N = self.feat_dim, self.out_dim
        Kp = int(_round_up(K, 128))
        Np = int(_round_up(N, 128))
        w_t = self.weight.T.astype(self.compute_dtype)          # (K, N)
        self.weight_t_p = jnp.pad(w_t, ((0, Kp - K), (0, Np - N)))
        self.bias_p = jnp.pad(self.bias.astype(jnp.float32),
                              ((0, 0), (0, Np - N)))

    def __call__(self, x, training=False):
        """x: (batch, time, feat_dim) -> (batch, time, out_dim)."""
        if training:
            # pkwrap applies this in-place on the weight before the affine op.
            # TODO(synk): mutating Python state will not persist under jit/scan;
            # a functional train step should thread the weight explicitly.
            self.weight = constrain_orthonormal_jax(self.weight, self.scale)
            self._refresh_derived()
        return _forward_impl(x, self.weight_t_p, self.bias_p,
                             out_dim=self.out_dim,
                             compute_dtype=self.compute_dtype,
                             vmem_budget_bytes=self.vmem_budget_bytes)


# ----------------------------------------------------------------------------
# Pure-JAX reference
# ----------------------------------------------------------------------------
def reference_forward(x, weight, bias, compute_dtype=None):
    if (compute_dtype is not None
            and jnp.dtype(compute_dtype) != jnp.dtype(jnp.float32)):
        x = x.astype(compute_dtype)
        weight = weight.astype(compute_dtype)
        precision = None
    else:
        precision = jax.lax.Precision.HIGHEST
    y = jnp.einsum("btd,nd->btn", x, weight,
                   preferred_element_type=jnp.float32, precision=precision)
    return y + bias.astype(jnp.float32)[None, :, :]


if __name__ == "__main__":
    key = jax.random.PRNGKey(0)
    k1, k2, k3, k4, k5, k6, k7 = jax.random.split(key, 7)

    # --- 1) small shapes, f32 compute: tight check of the resident-weight path
    batch, seq, feat_dim, out_dim = 2, 8, 32, 48
    x = jax.random.normal(k1, (batch, seq, feat_dim), jnp.float32)
    layer = OrthonormalLinearPallas(feat_dim, out_dim, bias=True, scale=-1.0,
                                    key=k2, compute_dtype=jnp.float32)
    y = jax.block_until_ready(layer(x, training=False))
    y_ref = reference_forward(x, layer.weight, layer.bias)
    assert y.shape == (batch, seq, out_dim)
    assert jnp.allclose(y, y_ref, atol=1e-4, rtol=1e-4), "small f32 mismatch"

    # --- 2) mid-sized, non-tile-aligned, default bf16 compute (resident path,
    #         exercises padding, bf16 sublane tiling and the megacore M split)
    b2, t2, fd2, od2 = 4, 80, 384, 320
    x2 = jax.random.normal(k3, (b2, t2, fd2), jnp.float32)
    layer2 = OrthonormalLinearPallas(fd2, od2, bias=True, scale=0.5, key=k4)
    y2 = jax.block_until_ready(layer2(x2, training=False))
    y2_ref_bf16 = reference_forward(x2, layer2.weight, layer2.bias,
                                    compute_dtype=jnp.bfloat16)
    assert y2.shape == (b2, t2, od2)
    assert jnp.allclose(y2, y2_ref_bf16, atol=5e-3, rtol=5e-3), \
        "bf16 resident mismatch"
    y2_ref_f32 = reference_forward(x2, layer2.weight, layer2.bias)
    assert jnp.allclose(y2, y2_ref_f32, atol=5e-2, rtol=5e-2), \
        "bf16 drift vs f32 too large"

    # --- 3) force the (M, N, K) fallback path with multiple K steps (f32)
    fd3, od3 = 384, 256
    w3 = jax.random.normal(k5, (od3, fd3), jnp.float32) / (fd3 * od3) ** 0.5
    b3 = jax.random.normal(k6, (1, od3), jnp.float32)
    x3 = jax.random.normal(k7, (2, 100, fd3), jnp.float32)
    y3 = affine_pallas(x3.reshape(-1, fd3), w3.T, b3, orig_n=od3,
                       compute_dtype=jnp.float32,
                       vmem_budget_bytes=1,       # force the fallback path
                       fallback_tk=128)           # 3 K grid steps (accumulator)
    y3 = jax.block_until_ready(y3).reshape(2, 100, od3)
    y3_ref = reference_forward(x3, w3, b3)
    assert jnp.allclose(y3, y3_ref, atol=1e-4, rtol=1e-4), "fallback mismatch"

    # TODO(synk): NG-SGD preconditioners (Kaldi OnlineNaturalGradient) only alter
    # gradients in backward; no forward-pass equivalent is required.
    print("KERNEL_OK")
</pallas_src>

<mosaic_0001>
module attributes {stable_mosaic.version = 11 : i64} {
  func.func @_affine_resident_kernel(%arg0: i32, %arg1: memref<8x128xf32, #tpu.memory_space<vmem>>, %arg2: memref<128x128xf32, #tpu.memory_space<vmem>>, %arg3: memref<1x128xf32, #tpu.memory_space<vmem>>, %arg4: memref<8x128xf32, #tpu.memory_space<vmem>>) attributes {dimension_semantics = [#tpu.dimension_semantics<parallel>], iteration_bounds = array<i64: 2>, scalar_prefetch = 0 : i64, scratch_operands = 0 : i64, tpu.core_type = #tpu.core_type<tc>, window_params = [{transform_indices = @transform_0, window_bounds = array<i64: 8, 128>}, {pipeline_mode = #tpu.pipeline_mode<synchronous>, transform_indices = @transform_1, window_bounds = array<i64: 128, 128>}, {pipeline_mode = #tpu.pipeline_mode<synchronous>, transform_indices = @transform_2, window_bounds = array<i64: 1, 128>}, {transform_indices = @transform_3, window_bounds = array<i64: 8, 128>}]} {
    %c0 = arith.constant 0 : index
    %c0_0 = arith.constant 0 : index
    %0 = vector.load %arg1[%c0, %c0_0] : memref<8x128xf32, #tpu.memory_space<vmem>>, vector<8x128xf32>
    %c0_1 = arith.constant 0 : index
    %c0_2 = arith.constant 0 : index
    %1 = vector.load %arg2[%c0_1, %c0_2] : memref<128x128xf32, #tpu.memory_space<vmem>>, vector<128x128xf32>
    %cst = arith.constant dense<0.000000e+00> : vector<8x128xf32>
    %2 = tpu.matmul %0, %1, %cst {dimension_numbers = #tpu.dot_dimension_numbers<[1], [0], [0], [1], [0, 0, 1, 1], [], []>} : vector<8x128xf32>, vector<128x128xf32>, vector<8x128xf32> -> vector<8x128xf32>
    %c0_3 = arith.constant 0 : index
    %c0_4 = arith.constant 0 : index
    %3 = vector.load %arg3[%c0_3, %c0_4] : memref<1x128xf32, #tpu.memory_space<vmem>>, vector<1x128xf32>
    %4 = vector.broadcast %3 : vector<1x128xf32> to vector<8x128xf32>
    %5 = arith.addf %2, %4 : vector<8x128xf32>
    %c0_5 = arith.constant 0 : index
    %c0_6 = arith.constant 0 : index
    %6 = vector.load %arg4[%c0_5, %c0_6] : memref<8x128xf32, #tpu.memory_space<vmem>>, vector<8x128xf32>
    tpu.vector_store %arg4[%c0_5, %c0_6], %5 {strides = array<i32>} : memref<8x128xf32, #tpu.memory_space<vmem>>, vector<8x128xf32>,
    return
  }
  func.func @transform_0(%arg0: i32) -> (i32, i32) {
    %c0_i32 = arith.constant 0 : i32
    %c0_i32_0 = arith.constant 0 : i32
    return %arg0, %c0_i32 : i32, i32
  }
  func.func @transform_1(%arg0: i32) -> (i32, i32) {
    %c0_i32 = arith.constant 0 : i32
    %c0_i32_0 = arith.constant 0 : i32
    %c0_i32_1 = arith.constant 0 : i32
    return %c0_i32, %c0_i32_0 : i32, i32
  }
  func.func @transform_2(%arg0: i32) -> (i32, i32) {
    %c0_i32 = arith.constant 0 : i32
    %c0_i32_0 = arith.constant 0 : i32
    %c0_i32_1 = arith.constant 0 : i32
    return %c0_i32, %c0_i32_0 : i32, i32
  }
  func.func @transform_3(%arg0: i32) -> (i32, i32) {
    %c0_i32 = arith.constant 0 : i32
    %c0_i32_0 = arith.constant 0 : i32
    return %arg0, %c0_i32 : i32, i32
  }
}

</mosaic_0001>

<bundles_post_ra>
// kernel: _forward_impl.1
= control target key start
LH: loop header
LB: loop body
LE: loop exit
PB: predicated region body
PF: predicated region fallthrough
CT: control target
= control target key end

     0   :  { %8 = vsyncpa [#allocation3], 0  ;;  %s388_s12 = smov 0   ;;  %s416_s0 = inlined_call_operand.vmem [shape: f32[16,128], index: 0, kind: input, shape index: {}]   ;;  %s417_s1 = inlined_call_operand.hbm [shape: f32[128,128], index: 1, kind: input, shape index: {}]   ;;  %s418_s2 = inlined_call_operand.vmem [shape: f32[1,128], index: 2, kind: input, shape index: {}]   ;;  %s419_s3 = inlined_call_operand.vmem [shape: f32[16,128], index: 3, kind: output, shape index: {}]  }
   0x1 LB: > { %s124_s15 = sshll.u32 %s417_s1, 4  ;;  %s397_s16 = sadd.s32 4294967295, %s363_s12   ;;  %s363_s12 = sphi %s388_s12, %s14_s12   ;;  %s125_s15 = int_to_ptr.hbm [resolvable:$true] %s124_s15 }
   0x2   : > { %p292_p0 = scmp.ge.s32.totalorder %s363_s12, 1  ;;  %p113_p1 = scmp.lt.s32.totalorder %s363_s12, 3 }
   0x3   : > { %p309_p2 = scmp.eq.s32.totalorder %s397_s16, 0  ;;  %s365_s17 = smov [#allocation2]  }
   0x4   : > { %p114_p3 = pnand %p292_p0, %p113_p1  ;;  %s126_s18 = sshll.u32 %s365_s17, 4  ;;  %s127_s18 = int_to_ptr.vmem [resolvable:$true] %s126_s18 }
   0x5   : > { %s366_s19 = smov 128   ;;  %s367_s20 = smov 8  }
   0x6   : > { %p305_p4 = pneg %p114_p3  ;;  %152 = sbr.rel (%p114_p3) target bundleno = 173 (0xad), region = 32 }
   0x8   : > { %p306_p5 = pnand %p309_p2, %p305_p4 }
   0xa   : > { %308 = dma.hbm_to_vmem [thread:$0]  (!%p306_p5), %s125_s15, 2048, %s127_s18, [#allocation3], %s366_s19, %s366_s19, %s367_s20  }
   0xb   : > { %358 = dma.done.wait (%p309_p2), [#allocation3], 2048  }
   0xc   : > { %360 = vsyncadd (%p309_p2), [#allocation3], 4294965248  ;;  %v199_v0 = vld [vmem:[#allocation2 + $0x78] sm:$0xff]  ;;  %v198_v1 = vld [vmem:[#allocation2 + $0x70] sm:$0xff]  ;;  %p175_p6 = scmp.lt.s32.totalorder %s397_s16, 1 }
   0xd   : > { %204 = vmatpush.msra.mxu0 %v199_v0  ;;  %v197_v2 = vld [vmem:[#allocation2 + $0x68] sm:$0xff]  ;;  %v196_v3 = vld [vmem:[#allocation2 + $0x60] sm:$0xff]  ;;  %v195_v4 = vld [vmem:[#allocation2 + $0x58] sm:$0xff] }
   0xe   : > { %v194_v5 = vld [vmem:[#allocation2 + $0x50] sm:$0xff]  ;;  %v193_v6 = vld [vmem:[#allocation2 + $0x48] sm:$0xff]  ;;  %v192_v7 = vld [vmem:[#allocation2 + $0x40] sm:$0xff]  ;;  %s421_s16 = smov (!%p175_p6, %s397_s16), 1 }
   0xf   : > { %205 = vmatpush.msra.mxu0 %v198_v1  ;;  %v191_v8 = vld [vmem:[#allocation2 + $0x38] sm:$0xff]  ;;  %v190_v9 = vld [vmem:[#allocation2 + $0x30] sm:$0xff]  ;;  %v189_v10 = vld [vmem:[#allocation2 + $0x28] sm:$0xff]  ;;  %s297_s21 = sshll.u32 %s421_s16, 3 }
  0x10   : > { %v188_v11 = vld [vmem:[#allocation2 + $0x20] sm:$0xff]  ;;  %v187_v12 = vld [vmem:[#allocation2 + $0x18] sm:$0xff]  ;;  %v186_v13 = vld [vmem:[#allocation2 + $0x10] sm:$0xff]  ;;  %s178_s24 = scalar_lea.vmem %s416_s0, %s297_s21  ;;  %s182_s29 = scalar_lea.vmem %s419_s3, %s297_s21 }
  0x11   : > { %206 = vmatpush.msra.mxu0 %v197_v2  ;;  %v185_v14 = vld [vmem:[#allocation2 + $0x8] sm:$0xff]  ;;  %v184_v15 = vld [vmem:[#allocation2] sm:$0xff] }
  0x12   : > { %v183_v16 = vld [vmem:[%s178_s24] sm:$0xff] }
  0x13   : > { %207 = vmatpush.msra.mxu0 %v196_v3  ;;  %v322_v17 = vld [vmem:[%s418_s2] ss:$0 sm:$0xff] }
  0x15   : > { %208 = vmatpush.msra.mxu0 %v195_v4 }
  0x17   : > { %209 = vmatpush.msra.mxu0 %v194_v5 }
  0x19   : > { %210 = vmatpush.msra.mxu0 %v193_v6 }
  0x1b   : > { %211 = vmatpush.msra.mxu0 %v192_v7 }
  0x1d   : > { %212 = vmatpush.msra.mxu0 %v191_v8 }
  0x1f   : > { %213 = vmatpush.msra.mxu0 %v190_v9 }
  0x21   : > { %214 = vmatpush.msra.mxu0 %v189_v10 }
  0x23   : > { %215 = vmatpush.msra.mxu0 %v188_v11 }
  0x25   : > { %216 = vmatpush.msra.mxu0 %v187_v12 }
  0x27   : > { %217 = vmatpush.msra.mxu0 %v186_v13 }
  0x29   : > { %218 = vmatpush.msra.mxu0 %v185_v14 }
  0x2b   : > { %219 = vmatpush.msra.mxu0 %v184_v15 }
  0x2c   : > { %220 = vmatmul.f32.vlgmr.msra.gmra.mxu0 %v183_v16 }
  0xa9   : > { %v221_v18 = vpop.f32.mrf.mxu0 }
  0xaa   : > { %v222_v19 = vadd.f32 %v322_v17, %v221_v18 }
  0xac   : > { %224 = vst [vmem:[%s182_s29] sm:$0xff] %v222_v19 }
  0xad PF: > { %s14_s12 = sadd.s32 1, %s363_s12  }
  0xae   : > { %p11_p7 = scmp.ge.s32.totalorder %s14_s12, 4  }
  0xb0   :  { %13 = sbr.rel (!%p11_p7) target bundleno = 1 (0x1), region = 67 }
  0xb5   :  { %244 = vsyncpa [#allocation3], 1 }
  0xb6   :  { %246 = vsyncpa [#allocation3 + $0x1], 1 }

</bundles_post_ra>
